<compile_context>
chip_gen: v7x
topology: tpu7x:2x2x1
jax: 0.10.0
libtpu: 0.0.40
codegen_flags: <defaults>
</compile_context>

<pallas_src>
import math

import jax
import jax.numpy as jnp
from jax.experimental import pallas as pl
from jax.experimental.pallas import tpu as pltpu


# ----------------------------------------------------------------------------
# Buffer construction (plain JAX — mirrors nn.Module.__init__)
# ----------------------------------------------------------------------------
def make_pos_embedding(hidden_dim: int, groups: int = 1, max_length: int = 3000):
    """Builds the (1, hidden_dim, max_length) sinusoidal buffer deterministically."""
    h = hidden_dim // groups
    position = jnp.arange(max_length, dtype=jnp.float32)[:, None]            # (L, 1)
    div_term = jnp.exp(
        jnp.arange(0, h, 2, dtype=jnp.float32) * (-math.log(10000.0) / h)
    )                                                                         # (h/2,)
    sin = jnp.sin(position * div_term).T                                      # (h/2, L)
    cos = jnp.cos(position * div_term).T                                      # (h/2, L)

    pe = jnp.zeros((h, max_length), dtype=jnp.float32)
    pe = pe.at[0::2, :].set(sin)
    pe = pe.at[1::2, :].set(cos)
    pe = pe * 0.5
    pe = jnp.tile(pe, (groups, 1))                                            # (C, L)
    return pe[None, :, :]                                                     # (1, C, L)


# ----------------------------------------------------------------------------
# Kernels
# ----------------------------------------------------------------------------
def _add_pe_batched_kernel(x_ref, pe_ref, o_ref):
    # x_ref/o_ref: (B, C, tT);  pe_ref: (C, tT) (batch dim squeezed).
    x = x_ref[...].astype(jnp.float32)
    pe = pe_ref[...].astype(jnp.float32)
    o_ref[...] = (x + pe[None, :, :]).astype(o_ref.dtype)


def _add_pe_kernel(x_ref, pe_ref, o_ref):
    # Refs are 2D (tC, tT): the size-1 batch dim is squeezed away.
    o_ref[...] = (
        x_ref[...].astype(jnp.float32) + pe_ref[...].astype(jnp.float32)
    ).astype(o_ref.dtype)


def _round_up(v: int, m: int) -> int:
    return ((v + m - 1) // m) * m


# ----------------------------------------------------------------------------
# Wrapper
# ----------------------------------------------------------------------------
def positional_embedding_forward(
    x: jax.Array,
    pos_embedding: jax.Array,
    *,
    vmem_budget_bytes: int = 16 * 1024 * 1024,   # block bytes incl. double-buffering
) -> jax.Array:
    """x: (B, C, T);  pos_embedding: (1, C, max_length).  Returns (B, C, T)."""
    B, C, T = x.shape
    _, C_pe, L = pos_embedding.shape
    assert C_pe == C, "pos_embedding channel dim must match x"
    assert T <= L, "sequence length exceeds max_length of the positional table"

    # Match PyTorch type promotion (x + f32 buffer).
    out_dtype = jnp.result_type(x.dtype, pos_embedding.dtype)
    x_b = jnp.dtype(x.dtype).itemsize
    pe_b = jnp.dtype(pos_embedding.dtype).itemsize
    o_b = jnp.dtype(out_dtype).itemsize

    # Lane-tile candidates (largest first).  T >= 128: multiples of 128 so the
    # (8,128) rule holds and ragged tails are masked by Pallas.  T < 128: use
    # the full T (full-dim lane block); the PE table is then sliced so its lane
    # block also equals its full dim (tiny copy).
    if T >= 128:
        cap = min(2048, _round_up(T, 128))
        tT_opts = list(range(cap, 127, -128))
        pe_in = pos_embedding
    else:
        tT_opts = [T]
        pe_in = pos_embedding[:, :, :T]

    def batched_bytes(tC, tT):   # whole batch resident in one block (×2: dbl-buffer)
        return 2 * tC * tT * (B * (x_b + o_b) + pe_b)

    def perbatch_bytes(tC, tT):  # one batch element per block
        return 2 * tC * tT * (x_b + o_b + pe_b)

    compiler_params = pltpu.CompilerParams(
        dimension_semantics=None,              # set per-path below
        vmem_limit_bytes=32 * 1024 * 1024,     # portable (<= physical on v5e/v6e/v7x)
    )

    # ---- Path 1: whole-batch blocks (PE fetched once per (c,t) tile) ----------
    for tT in tT_opts:
        if batched_bytes(C, tT) <= vmem_budget_bytes:
            grid = (pl.cdiv(T, tT),)
            in_specs = [
                pl.BlockSpec((B, C, tT), lambda t: (0, 0, t)),
                pl.BlockSpec((pl.Squeezed(), C, tT), lambda t: (0, 0, t)),
            ]
            out_spec = pl.BlockSpec((B, C, tT), lambda t: (0, 0, t))
            return pl.pallas_call(
                _add_pe_batched_kernel,
                out_shape=jax.ShapeDtypeStruct((B, C, T), out_dtype),
                grid=grid,
                in_specs=in_specs,
                out_specs=out_spec,
                compiler_params=pltpu.CompilerParams(
                    dimension_semantics=("parallel",),
                    vmem_limit_bytes=32 * 1024 * 1024,
                ),
            )(x, pe_in)

    # ---- Path 2/3: one batch element per block, batch innermost ----------------
    tT = tT_opts[0]
    for cand in tT_opts:
        if perbatch_bytes(C, cand) <= vmem_budget_bytes:
            tT = cand
            break
    else:
        tT = tT_opts[-1]

    if perbatch_bytes(C, tT) <= vmem_budget_bytes:
        tC = C                                           # full-channel blocks
    else:
        # Only for very large C: tile channels too (multiple-of-8 sublanes).
        tC = (vmem_budget_bytes // (2 * tT * (x_b + o_b + pe_b))) // 8 * 8
        tC = int(max(8, min(C, tC)))

    n_c = pl.cdiv(C, tC)
    n_t = pl.cdiv(T, tT)
    # Batch innermost => the PE block index (0, c, t) is constant across the B
    # consecutive iterations, so its HBM->VMEM DMA is issued only once per tile.
    grid = (n_c, n_t, B)
    in_specs = [
        pl.BlockSpec((pl.Squeezed(), tC, tT), lambda c, t, b: (b, c, t)),
        pl.BlockSpec((pl.Squeezed(), tC, tT), lambda c, t, b: (0, c, t)),
    ]
    out_spec = pl.BlockSpec((pl.Squeezed(), tC, tT), lambda c, t, b: (b, c, t))

    # TODO(synk): if the caller can donate x, add input_output_aliases={0: 0} to
    # save HBM capacity for large activations (footprint win, not bandwidth).
    return pl.pallas_call(
        _add_pe_kernel,
        out_shape=jax.ShapeDtypeStruct((B, C, T), out_dtype),
        grid=grid,
        in_specs=in_specs,
        out_specs=out_spec,
        compiler_params=pltpu.CompilerParams(
            dimension_semantics=("parallel", "parallel", "parallel"),
            vmem_limit_bytes=32 * 1024 * 1024,
        ),
    )(x, pe_in)


# ----------------------------------------------------------------------------
# Demo / correctness checks
# ----------------------------------------------------------------------------
if __name__ == "__main__":
    key = jax.random.PRNGKey(0)

    B, hidden_dim = 2, 32
    groups, max_length = 2, 512
    pos_embedding = make_pos_embedding(hidden_dim, groups=groups, max_length=max_length)

    def check(x, **kw):
        out = jax.block_until_ready(positional_embedding_forward(x, pos_embedding, **kw))
        ref = x + pos_embedding[..., : x.shape[-1]]
        assert out.shape == x.shape
        assert out.dtype == ref.dtype
        assert jnp.allclose(out, ref, atol=1e-6, rtol=1e-6)

    # 1) main case: batched whole-block path, T multiple of 128
    x = jax.random.normal(key, (B, hidden_dim, 256), dtype=jnp.float32)
    check(x)

    # 2) ragged T (> 128, not a multiple of 128): masked tail handling
    x_r = jax.random.normal(jax.random.PRNGKey(1), (B, hidden_dim, 200), dtype=jnp.float32)
    check(x_r)

    # 3) tiny T (< 128): full-dim lane block with sliced PE
    x_s = jax.random.normal(jax.random.PRNGKey(2), (B, hidden_dim, 16), dtype=jnp.float32)
    check(x_s)

    # 4) forced per-batch path (budget too small for the whole batch in one block)
    check(x, vmem_budget_bytes=250_000)

    # 5) forced channel-tiled fallback (budget too small even for full-C blocks)
    check(x, vmem_budget_bytes=80_000)

    print("KERNEL_OK")
</pallas_src>

<mosaic_0001>
module attributes {stable_mosaic.version = 11 : i64} {
  func.func @_add_pe_batched_kernel(%arg0: i32, %arg1: memref<2x32x256xf32, #tpu.memory_space<vmem>>, %arg2: memref<1x32x256xf32, #tpu.memory_space<vmem>>, %arg3: memref<2x32x256xf32, #tpu.memory_space<vmem>>) attributes {dimension_semantics = [#tpu.dimension_semantics<parallel>], iteration_bounds = array<i64: 1>, scalar_prefetch = 0 : i64, scratch_operands = 0 : i64, tpu.core_type = #tpu.core_type<tc>, window_params = [{transform_indices = @transform_0, window_bounds = array<i64: 2, 32, 256>}, {transform_indices = @transform_1, window_bounds = array<i64: 1, 32, 256>}, {transform_indices = @transform_2, window_bounds = array<i64: 2, 32, 256>}]} {
    %c0 = arith.constant 0 : index
    %c0_0 = arith.constant 0 : index
    %c0_1 = arith.constant 0 : index
    %0 = vector.load %arg1[%c0, %c0_0, %c0_1] : memref<2x32x256xf32, #tpu.memory_space<vmem>>, vector<2x32x256xf32>
    %c0_2 = arith.constant 0 : index
    %c0_3 = arith.constant 0 : index
    %c0_4 = arith.constant 0 : index
    %1 = vector.load %arg2[%c0_2, %c0_3, %c0_4] : memref<1x32x256xf32, #tpu.memory_space<vmem>>, vector<1x32x256xf32>
    %2 = vector.shape_cast %1 : vector<1x32x256xf32> to vector<32x256xf32>
    %3 = vector.shape_cast %2 : vector<32x256xf32> to vector<1x32x256xf32>
    %4 = vector.broadcast %3 : vector<1x32x256xf32> to vector<2x32x256xf32>
    %5 = arith.addf %0, %4 : vector<2x32x256xf32>
    %c0_5 = arith.constant 0 : index
    %c0_6 = arith.constant 0 : index
    %c0_7 = arith.constant 0 : index
    %6 = vector.load %arg3[%c0_5, %c0_6, %c0_7] : memref<2x32x256xf32, #tpu.memory_space<vmem>>, vector<2x32x256xf32>
    tpu.vector_store %arg3[%c0_5, %c0_6, %c0_7], %5 {strides = array<i32>} : memref<2x32x256xf32, #tpu.memory_space<vmem>>, vector<2x32x256xf32>,
    return
  }
  func.func @transform_0(%arg0: i32) -> (i32, i32, i32) {
    %c0_i32 = arith.constant 0 : i32
    %c0_i32_0 = arith.constant 0 : i32
    %c0_i32_1 = arith.constant 0 : i32
    return %c0_i32, %c0_i32_0, %arg0 : i32, i32, i32
  }
  func.func @transform_1(%arg0: i32) -> (i32, i32, i32) {
    %c0_i32 = arith.constant 0 : i32
    %c0_i32_0 = arith.constant 0 : i32
    %c0_i32_1 = arith.constant 0 : i32
    return %c0_i32, %c0_i32_0, %arg0 : i32, i32, i32
  }
  func.func @transform_2(%arg0: i32) -> (i32, i32, i32) {
    %c0_i32 = arith.constant 0 : i32
    %c0_i32_0 = arith.constant 0 : i32
    %c0_i32_1 = arith.constant 0 : i32
    return %c0_i32, %c0_i32_0, %arg0 : i32, i32, i32
  }
}

</mosaic_0001>

<bundles_post_ra>
// kernel: tpu_custom_call.1
= control target key start
LH: loop header
LB: loop body
LE: loop exit
PB: predicated region body
PF: predicated region fallthrough
CT: control target
= control target key end

     0   :  { %7 = vsyncpa [#allocation3], 0  ;;  %s260_s0 = inlined_call_operand.hbm [shape: f32[2,32,256], index: 0, kind: input, shape index: {}]   ;;  %s261_s1 = inlined_call_operand.hbm [shape: f32[1,32,512], index: 1, kind: input, shape index: {}]   ;;  %s262_s2 = inlined_call_operand.hbm [shape: f32[2,32,256], index: 2, kind: output, shape index: {}]  }
   0x1   :  { %8 = vsyncpa [#allocation6], 0 }
   0x2   :  { %9 = vsyncpa [#allocation4], 0  ;;  %s192_s9 = smov [#allocation2]   ;;  %s120_s13 = scalar_lea.hbm %s260_s0, 2048 }
   0x3   :  { %s15_s10 = sshll.u32 %s192_s9, 4  ;;  %p121_p0 = scmp.ne.s32.totalorder %s260_s0, %s120_s13  ;;  %s16_s10 = int_to_ptr.vmem [resolvable:$true] %s15_s10 }
   0x4   :  { %p124_p1 = scmp.lt.u32.totalorder %s120_s13, %s260_s0 }
   0x6   :  { %p126_p2 = pnand %p124_p1, %p121_p0 }
   0x8   :  { %129 = shalt.err (!%p126_p2)
}
   0x9   :  { %s130_s18 = scalar_lea.vmem %s16_s10, 2048  ;;  %p135_p4 = scmp.lt.s32.totalorder %s16_s10, %s16_s10 }
   0xa   :  { %p131_p3 = scmp.ne.s32.totalorder %s16_s10, %s130_s18  ;;  %p136_p5 = scmp.lt.s32.totalorder %s130_s18, %s130_s18 }
   0xc   :  { %p137_p6 = por %p136_p5, %p135_p4 }
   0xe   :  { %p138_p7 = pnand %p137_p6, %p131_p3 }
  0x10   :  { %141 = shalt.err (!%p138_p7)
}
  0x11   :  { %s193_s19 = smov 256   ;;  %s194_s20 = smov 16  }
  0x12   :  { %21 = dma.hbm_to_vmem [thread:$0]  %s260_s0, 2048, %s16_s10, [#allocation3], %s193_s19, %s193_s19, %s194_s20  }
  0x13   :  { %s195_s23 = smov [#allocation5]   ;;  %s142_s27 = scalar_lea.hbm %s261_s1, 1024 }
  0x14   :  { %s27_s24 = sshll.u32 %s195_s23, 4  ;;  %p143_p8 = scmp.ne.s32.totalorder %s261_s1, %s142_s27  ;;  %s28_s24 = int_to_ptr.vmem [resolvable:$true] %s27_s24 }
  0x15   :  { %s144_s4 = scalar_lea.hbm %s261_s1, 2048  ;;  %p146_p10 = scmp.lt.u32.totalorder %s142_s27, %s261_s1 }
  0x16   :  { %p145_p9 = scmp.lt.u32.totalorder %s144_s4, %s142_s27 }
  0x18   :  { %p147_p11 = por %p146_p10, %p145_p9 }
  0x1a   :  { %p148_p12 = pnand %p147_p11, %p143_p8 }
  0x1c   :  { %151 = shalt.err (!%p148_p12)
}
  0x1d   :  { %s152_s0 = scalar_lea.vmem %s28_s24, 1024  ;;  %p157_p0 = scmp.lt.s32.totalorder %s28_s24, %s28_s24 }
  0x1e   :  { %p153_p13 = scmp.ne.s32.totalorder %s28_s24, %s152_s0  ;;  %p158_p1 = scmp.lt.s32.totalorder %s152_s0, %s152_s0 }
  0x20   :  { %p159_p2 = por %p158_p1, %p157_p0 }
  0x22   :  { %p160_p3 = pnand %p159_p2, %p153_p13 }
  0x24   :  { %163 = shalt.err (!%p160_p3)
}
  0x25   :  { %s196_s7 = smov 512  }
  0x26   :  { %33 = dma.hbm_to_vmem [thread:$0]  %s261_s1, 1024, %s28_s24, [#allocation6], %s196_s7, %s193_s19, %s194_s20  }
  0x27   :  { %186 = dma.done.wait [#allocation3], 2048  }
  0x28   :  { %187 = vsyncadd [#allocation3], 4294965248 }
  0x29   :  { %188 = dma.done.wait [#allocation6], 1024  }
  0x2a   :  { %189 = vsyncadd [#allocation6], 4294966272  ;;  %v40_v0 = vld [vmem:[#allocation2] sm:$0xff]  ;;  %v41_v2 = vld [vmem:[#allocation2 + $0x8] sm:$0xff]  ;;  %s197_s1 = smov [#allocation7]  }
  0x2b   :  { %v56_v1 = vld [vmem:[#allocation5] sm:$0xff]  ;;  %v57_v4 = vld [vmem:[#allocation5 + $0x8] sm:$0xff]  ;;  %v42_v5 = vld [vmem:[#allocation2 + $0x10] sm:$0xff]  ;;  %s101_s10 = sshll.u32 %s197_s1, 4  ;;  %s102_s10 = int_to_ptr.vmem [resolvable:$true] %s101_s10 }
  0x2c   :  { %v64_v3 = vadd.f32 %v56_v1, %v40_v0  ;;  %v58_v6 = vld [vmem:[#allocation5 + $0x10] sm:$0xff]  ;;  %v65_v7 = vadd.f32 %v57_v4, %v41_v2  ;;  %v43_v9 = vld [vmem:[#allocation2 + $0x18] sm:$0xff]  ;;  %v44_v11 = vld [vmem:[#allocation2 + $0x20] sm:$0xff]  ;;  %s164_s11 = scalar_lea.vmem %s102_s10, 2048  ;;  %p169_p5 = scmp.lt.s32.totalorder %s102_s10, %s102_s10 }
  0x2d   :  { %v66_v8 = vadd.f32 %v58_v6, %v42_v5  ;;  %v59_v10 = vld [vmem:[#allocation5 + $0x18] sm:$0xff]  ;;  %v60_v13 = vld [vmem:[#allocation5 + $0x20] sm:$0xff]  ;;  %v45_v14 = vld [vmem:[#allocation2 + $0x28] sm:$0xff]  ;;  %p165_p4 = scmp.ne.s32.totalorder %s102_s10, %s164_s11  ;;  %p170_p6 = scmp.lt.s32.totalorder %s164_s11, %s164_s11 }
  0x2e   :  { %80 = vst [vmem:[#allocation7] sm:$0xff] %v64_v3  ;;  %v67_v12 = vadd.f32 %v59_v10, %v43_v9  ;;  %v61_v15 = vld [vmem:[#allocation5 + $0x28] sm:$0xff]  ;;  %81 = vst [vmem:[#allocation7 + $0x8] sm:$0xff] %v65_v7  ;;  %v68_v16 = vadd.f32 %v60_v13, %v44_v11  ;;  %v46_v18 = vld [vmem:[#allocation2 + $0x30] sm:$0xff] }
  0x2f   :  { %82 = vst [vmem:[#allocation7 + $0x10] sm:$0xff] %v66_v8  ;;  %v69_v17 = vadd.f32 %v61_v15, %v45_v14  ;;  %v62_v19 = vld [vmem:[#allocation5 + $0x30] sm:$0xff]  ;;  %v47_v20 = vld [vmem:[#allocation2 + $0x38] sm:$0xff]  ;;  %v48_v23 = vld [vmem:[#allocation2 + $0x40] sm:$0xff]  ;;  %p171_p7 = por %p170_p6, %p169_p5 }
  0x30   :  { %83 = vst [vmem:[#allocation7 + $0x18] sm:$0xff] %v67_v12  ;;  %v70_v21 = vadd.f32 %v62_v19, %v46_v18  ;;  %v63_v22 = vld [vmem:[#allocation5 + $0x38] sm:$0xff]  ;;  %v49_v24 = vld [vmem:[#allocation2 + $0x48] sm:$0xff]  ;;  %84 = vst [vmem:[#allocation7 + $0x20] sm:$0xff] %v68_v16  ;;  %v72_v26 = vadd.f32 %v56_v1, %v48_v23 }
  0x31   :  { %85 = vst [vmem:[#allocation7 + $0x28] sm:$0xff] %v69_v17  ;;  %v71_v25 = vadd.f32 %v63_v22, %v47_v20  ;;  %v73_v27 = vadd.f32 %v57_v4, %v49_v24  ;;  %v50_v28 = vld [vmem:[#allocation2 + $0x50] sm:$0xff]  ;;  %v51_v29 = vld [vmem:[#allocation2 + $0x58] sm:$0xff]  ;;  %v52_v30 = vld [vmem:[#allocation2 + $0x60] sm:$0xff]  ;;  %p172_p8 = pnand %p171_p7, %p165_p4 }
  0x32   :  { %86 = vst [vmem:[#allocation7 + $0x30] sm:$0xff] %v70_v21  ;;  %v74_v31 = vadd.f32 %v58_v6, %v50_v28  ;;  %v75_v32 = vadd.f32 %v59_v10, %v51_v29  ;;  %v76_v33 = vadd.f32 %v60_v13, %v52_v30  ;;  %v53_v34 = vld [vmem:[#allocation2 + $0x68] sm:$0xff]  ;;  %v54_v35 = vld [vmem:[#allocation2 + $0x70] sm:$0xff]  ;;  %v55_v36 = vld [vmem:[#allocation2 + $0x78] sm:$0xff] }
  0x33   :  { %87 = vst [vmem:[#allocation7 + $0x38] sm:$0xff] %v71_v25  ;;  %88 = vst [vmem:[#allocation7 + $0x40] sm:$0xff] %v72_v26  ;;  %v77_v37 = vadd.f32 %v61_v15, %v53_v34  ;;  %v78_v38 = vadd.f32 %v62_v19, %v54_v35  ;;  %v79_v39 = vadd.f32 %v63_v22, %v55_v36 }
  0x34   :  { %89 = vst [vmem:[#allocation7 + $0x48] sm:$0xff] %v73_v27  ;;  %90 = vst [vmem:[#allocation7 + $0x50] sm:$0xff] %v74_v31 }
  0x35   :  { %91 = vst [vmem:[#allocation7 + $0x58] sm:$0xff] %v75_v32  ;;  %92 = vst [vmem:[#allocation7 + $0x60] sm:$0xff] %v76_v33 }
  0x36   :  { %93 = vst [vmem:[#allocation7 + $0x68] sm:$0xff] %v77_v37  ;;  %94 = vst [vmem:[#allocation7 + $0x70] sm:$0xff] %v78_v38 }
  0x37   :  { %95 = vst [vmem:[#allocation7 + $0x78] sm:$0xff] %v79_v39 }
  0x38   :  { %175 = shalt.err (!%p172_p8)
}
  0x39   :  { %s176_s14 = scalar_lea.hbm %s262_s2, 2048 }
  0x3a   :  { %p177_p9 = scmp.ne.s32.totalorder %s262_s2, %s176_s14  ;;  %p180_p10 = scmp.lt.u32.totalorder %s176_s14, %s262_s2 }
  0x3c   :  { %p182_p11 = pnand %p180_p10, %p177_p9 }
  0x3e   :  { %185 = shalt.err (!%p182_p11)
}
  0x3f   :  { %107 = dma.vmem_to_hbm [thread:$0]  %s102_s10, 2048, %s262_s2, [#allocation4], %s193_s19, %s193_s19, %s194_s20  }
  0x40   :  { %190 = dma.done.wait [#allocation4], 2048  }
  0x41   :  { %191 = vsyncadd [#allocation4], 4294965248 }
  0x42   :  { %111 = vsyncpa [#allocation3], 1 }
  0x43   :  { %112 = vsyncpa [#allocation6], 1 }
  0x44   :  { %113 = vsyncpa [#allocation4], 1 }

</bundles_post_ra>
